<compile_context>
chip_gen: v6e
topology: v6e:2x2x1
jax: 0.10.0
libtpu: 0.0.40
codegen_flags: <defaults>
</compile_context>

<pallas_src>
import functools

import jax
import jax.numpy as jnp
from jax import lax
from jax.experimental import pallas as pl
from jax.experimental.pallas import tpu as pltpu

STATE_DIM = 3        # Pendulum-v1 observation space
ACTION_DIM = 11      # N_DISCRETE_ACTIONS
HIDDEN = 128

DIN_PAD = 8          # state_dim 3 -> 8 (sublane-friendly; zero rows are inert)
DOUT_PAD = 128       # action_dim 11 -> 128 (lane-dense output stores)
TILE_B_MAX = 2048    # rows per grid step (out block = 1 MiB f32)
MIN_SPLIT_ROWS = 256 # force >=2 grid steps above this (v7x: feed both TCs)


# --------------------------------------------------------------------------
# Kernel bodies
# --------------------------------------------------------------------------
def _forward_block(x_ref, w1_ref, b1_ref, w2_ref, b2_ref, w3_ref, b3_ref):
    """Compute one (tile_b, DOUT_PAD) block of Q-values in f32."""
    x = x_ref[...]

    # Layer 1: state_dim = 3 -> three VPU broadcast-FMAs beat a zero-padded
    # MXU matmul (and its 3->128 input padding) by a wide margin.
    h1 = b1_ref[...]
    for d in range(STATE_DIM):                      # unrolled at trace time
        h1 = h1 + x[:, d:d + 1] * w1_ref[d:d + 1, :]
    h1 = jnp.maximum(h1, 0.0)

    # Layers 2 & 3: dense 128x128 MXU matmuls, f32 accumulation.
    # Weights may be bf16 (v5e fast path); cast activations to match.
    w2 = w2_ref[...]
    h2 = jnp.dot(h1.astype(w2.dtype), w2,
                 preferred_element_type=jnp.float32) + b2_ref[...]
    h2 = jnp.maximum(h2, 0.0)

    w3 = w3_ref[...]
    q = jnp.dot(h2.astype(w3.dtype), w3,
                preferred_element_type=jnp.float32) + b3_ref[...]
    return q


def _qnet_kernel(x_ref, w1_ref, b1_ref, w2_ref, b2_ref, w3_ref, b3_ref, o_ref):
    o_ref[...] = _forward_block(x_ref, w1_ref, b1_ref, w2_ref, b2_ref,
                                w3_ref, b3_ref)


def _qnet_greedy_kernel(x_ref, w1_ref, b1_ref, w2_ref, b2_ref, w3_ref, b3_ref,
                        a_ref, qmax_ref):
    # Fused DQN action selection: only argmax / max over actions leaves VMEM
    # (~8 B/row instead of 512 B/row of padded Q-values).
    q = _forward_block(x_ref, w1_ref, b1_ref, w2_ref, b2_ref, w3_ref, b3_ref)
    col = lax.broadcasted_iota(jnp.int32, q.shape, 1)
    qm = jnp.where(col < ACTION_DIM, q, -jnp.inf)          # mask padded lanes
    q_max = jnp.max(qm, axis=-1, keepdims=True)
    a = jnp.min(jnp.where(qm >= q_max, col, ACTION_DIM), axis=-1, keepdims=True)
    a_ref[...] = a
    qmax_ref[...] = q_max


# --------------------------------------------------------------------------
# Parameter preparation (one-time)
# --------------------------------------------------------------------------
def _pad_to(x, rows, cols):
    r, c = x.shape
    return jnp.pad(x, ((0, rows - r), (0, cols - c)))


def prepare_params(params, use_bf16=False):
    """One-time transpose+pad of PyTorch-layout params into kernel layout.

    Input:  w as (out_features, in_features), b as (out_features,)  [PyTorch]
    Output: w1 (8,128), w2 (128,128), w3 (128,128), biases (1,128); biases and
    w1 stay f32; w2/w3 are bf16 iff use_bf16 (v5e MXU fast path, ~1e-2 rel err).
    """
    w1, b1, w2, b2, w3, b3 = params
    mx_dt = jnp.bfloat16 if use_bf16 else jnp.float32
    w1_p = _pad_to(jnp.asarray(w1, jnp.float32).T, DIN_PAD, HIDDEN)
    b1_p = jnp.asarray(b1, jnp.float32).reshape(1, HIDDEN)
    w2_p = jnp.asarray(w2, jnp.float32).T.astype(mx_dt)
    b2_p = jnp.asarray(b2, jnp.float32).reshape(1, HIDDEN)
    w3_p = _pad_to(jnp.asarray(w3, jnp.float32).T, HIDDEN, DOUT_PAD).astype(mx_dt)
    b3_p = _pad_to(jnp.asarray(b3, jnp.float32).reshape(1, ACTION_DIM), 1, DOUT_PAD)
    return (w1_p, b1_p, w2_p, b2_p, w3_p, b3_p)


# --------------------------------------------------------------------------
# Tiling / pallas_call plumbing
# --------------------------------------------------------------------------
def _tiling(batch):
    bp0 = max(8, ((batch + 7) // 8) * 8)
    num_tiles = pl.cdiv(bp0, TILE_B_MAX)
    if num_tiles == 1 and bp0 >= MIN_SPLIT_ROWS:
        num_tiles = 2                       # v7x: give both TensorCores work
    tile_b = ((pl.cdiv(bp0, num_tiles) + 7) // 8) * 8   # balanced, 8-aligned
    bp = tile_b * num_tiles
    return bp, tile_b, num_tiles


def _specs(tile_b):
    x_spec = pl.BlockSpec((tile_b, DIN_PAD), lambda i: (i, 0))
    w_specs = [
        pl.BlockSpec((DIN_PAD, HIDDEN), lambda i: (0, 0)),   # w1 (resident)
        pl.BlockSpec((1, HIDDEN), lambda i: (0, 0)),         # b1
        pl.BlockSpec((HIDDEN, HIDDEN), lambda i: (0, 0)),    # w2
        pl.BlockSpec((1, HIDDEN), lambda i: (0, 0)),         # b2
        pl.BlockSpec((HIDDEN, DOUT_PAD), lambda i: (0, 0)),  # w3
        pl.BlockSpec((1, DOUT_PAD), lambda i: (0, 0)),       # b3
    ]
    return [x_spec] + w_specs


def _cost_estimate(bp):
    flops = bp * (2 * STATE_DIM * HIDDEN + 2 * HIDDEN * HIDDEN
                  + 2 * HIDDEN * DOUT_PAD)
    bytes_accessed = 4 * (bp * DIN_PAD + bp * DOUT_PAD
                          + DIN_PAD * HIDDEN + HIDDEN
                          + HIDDEN * HIDDEN + HIDDEN
                          + HIDDEN * DOUT_PAD + DOUT_PAD)
    return pl.CostEstimate(flops=flops, transcendentals=0,
                           bytes_accessed=bytes_accessed)


def _forward_padded_impl(x, prepared_params):
    """Core: (B, STATE_DIM) -> padded (Bp, DOUT_PAD) Q-values (f32).

    Rows >= B and columns >= ACTION_DIM are undefined (padding); no wrapper
    slice is performed here, so fused consumers pay no extra HBM copy.
    """
    w1_p, b1_p, w2_p, b2_p, w3_p, b3_p = prepared_params
    B = x.shape[0]
    bp, tile_b, num_tiles = _tiling(B)
    x_p = _pad_to(x.astype(jnp.float32), bp, DIN_PAD)

    return pl.pallas_call(
        _qnet_kernel,
        out_shape=jax.ShapeDtypeStruct((bp, DOUT_PAD), jnp.float32),
        grid=(num_tiles,),
        in_specs=_specs(tile_b),
        out_specs=pl.BlockSpec((tile_b, DOUT_PAD), lambda i: (i, 0)),
        compiler_params=pltpu.CompilerParams(
            dimension_semantics=("parallel",)),   # v7x: split batch over 2 TCs
        cost_estimate=_cost_estimate(bp),
    )(x_p, w1_p, b1_p, w2_p, b2_p, w3_p, b3_p)


def _greedy_impl(x, prepared_params):
    """Core: (B, STATE_DIM) -> padded ((Bp,1) int32 argmax, (Bp,1) f32 max Q)."""
    w1_p, b1_p, w2_p, b2_p, w3_p, b3_p = prepared_params
    B = x.shape[0]
    bp, tile_b, num_tiles = _tiling(B)
    x_p = _pad_to(x.astype(jnp.float32), bp, DIN_PAD)

    return pl.pallas_call(
        _qnet_greedy_kernel,
        out_shape=(jax.ShapeDtypeStruct((bp, 1), jnp.int32),
                   jax.ShapeDtypeStruct((bp, 1), jnp.float32)),
        grid=(num_tiles,),
        in_specs=_specs(tile_b),
        out_specs=(pl.BlockSpec((tile_b, 1), lambda i: (i, 0)),
                   pl.BlockSpec((tile_b, 1), lambda i: (i, 0))),
        compiler_params=pltpu.CompilerParams(
            dimension_semantics=("parallel",)),
    )(x_p, w1_p, b1_p, w2_p, b2_p, w3_p, b3_p)


# --------------------------------------------------------------------------
# Public entry points
# --------------------------------------------------------------------------
qnetwork_forward_padded = jax.jit(_forward_padded_impl)


@jax.jit
def qnetwork_forward(x, prepared_params):
    """x: (B, STATE_DIM) -> (B, ACTION_DIM) f32 (matches the PyTorch forward)."""
    out = _forward_padded_impl(x, prepared_params)
    return out[:x.shape[0], :ACTION_DIM]


@jax.jit
def qnetwork_greedy_action(x, prepared_params):
    """Fused DQN action selection: returns (argmax_a Q, max_a Q) per row."""
    a, q = _greedy_impl(x, prepared_params)
    B = x.shape[0]
    return a[:B, 0], q[:B, 0]


# --------------------------------------------------------------------------
# Reference / init / test
# --------------------------------------------------------------------------
def init_params(key):
    """Deterministic init matching PyTorch nn.Linear shapes: W is (out, in)."""
    ks = jax.random.split(key, 6)

    def linear(kw, kb, fan_in, fan_out):
        bound = 1.0 / jnp.sqrt(fan_in)
        w = jax.random.uniform(kw, (fan_out, fan_in), jnp.float32, -bound, bound)
        b = jax.random.uniform(kb, (fan_out,), jnp.float32, -bound, bound)
        return w, b

    w1, b1 = linear(ks[0], ks[1], STATE_DIM, HIDDEN)
    w2, b2 = linear(ks[2], ks[3], HIDDEN, HIDDEN)
    w3, b3 = linear(ks[4], ks[5], HIDDEN, ACTION_DIM)
    return (w1, b1, w2, b2, w3, b3)


def reference_forward(x, params):
    """Pure-JAX reference (mirrors the PyTorch forward exactly)."""
    w1, b1, w2, b2, w3, b3 = params
    h1 = jax.nn.relu(x @ w1.T + b1)
    h2 = jax.nn.relu(h1 @ w2.T + b2)
    return h2 @ w3.T + b3


if __name__ == "__main__":
    key = jax.random.PRNGKey(0)
    kp, kx1, kx2 = jax.random.split(key, 3)
    params = init_params(kp)
    prepared = prepare_params(params)                 # f32 (exact) weights

    # Small batch (single grid step).
    batch = 2
    x = jax.random.normal(kx1, (batch, STATE_DIM), jnp.float32)
    out = jax.block_until_ready(qnetwork_forward(x, prepared))
    ref = reference_forward(x, params)
    assert out.shape == (batch, ACTION_DIM), out.shape
    assert jnp.allclose(out, ref, atol=1e-5, rtol=1e-5)

    # Mid-size batch: exercises the forced 2-tile split (v7x both-TC path),
    # balanced tiling and resident weights.
    batch2 = 300
    x2 = jax.random.normal(kx2, (batch2, STATE_DIM), jnp.float32)
    out2 = jax.block_until_ready(qnetwork_forward(x2, prepared))
    ref2 = reference_forward(x2, params)
    assert out2.shape == (batch2, ACTION_DIM), out2.shape
    assert jnp.allclose(out2, ref2, atol=1e-5, rtol=1e-5)

    # Padded (slice-free) output path: valid region must still match.
    out2_pad = jax.block_until_ready(qnetwork_forward_padded(x2, prepared))
    assert out2_pad.shape[1] == DOUT_PAD
    assert jnp.allclose(out2_pad[:batch2, :ACTION_DIM], ref2, atol=1e-5, rtol=1e-5)

    # Fused greedy action selection (max/argmax over actions inside the kernel).
    act, qmax = jax.block_until_ready(qnetwork_greedy_action(x2, prepared))
    assert act.shape == (batch2,) and qmax.shape == (batch2,)
    assert jnp.array_equal(act, jnp.argmax(ref2, axis=-1))
    assert jnp.allclose(qmax, jnp.max(ref2, axis=-1), atol=1e-5, rtol=1e-5)

    # bf16 fc2/fc3 weights (v5e MXU fast path): looser tolerance by design.
    prepared_bf16 = prepare_params(params, use_bf16=True)
    out_bf16 = jax.block_until_ready(qnetwork_forward(x2, prepared_bf16))
    assert out_bf16.shape == (batch2, ACTION_DIM)
    assert jnp.allclose(out_bf16, ref2, atol=1e-1, rtol=1e-1)

    print("KERNEL_OK")
</pallas_src>

<mosaic_0001>
module attributes {stable_mosaic.version = 11 : i64} {
  func.func @_qnet_kernel(%arg0: i32, %arg1: memref<8x8xf32, #tpu.memory_space<vmem>>, %arg2: memref<8x128xf32, #tpu.memory_space<vmem>>, %arg3: memref<1x128xf32, #tpu.memory_space<vmem>>, %arg4: memref<128x128xf32, #tpu.memory_space<vmem>>, %arg5: memref<1x128xf32, #tpu.memory_space<vmem>>, %arg6: memref<128x128xf32, #tpu.memory_space<vmem>>, %arg7: memref<1x128xf32, #tpu.memory_space<vmem>>, %arg8: memref<8x128xf32, #tpu.memory_space<vmem>>) attributes {dimension_semantics = [#tpu.dimension_semantics<parallel>], iteration_bounds = array<i64: 1>, scalar_prefetch = 0 : i64, scratch_operands = 0 : i64, tpu.core_type = #tpu.core_type<tc>, window_params = [{transform_indices = @transform_0, window_bounds = array<i64: 8, 8>}, {pipeline_mode = #tpu.pipeline_mode<synchronous>, transform_indices = @transform_1, window_bounds = array<i64: 8, 128>}, {pipeline_mode = #tpu.pipeline_mode<synchronous>, transform_indices = @transform_2, window_bounds = array<i64: 1, 128>}, {pipeline_mode = #tpu.pipeline_mode<synchronous>, transform_indices = @transform_3, window_bounds = array<i64: 128, 128>}, {pipeline_mode = #tpu.pipeline_mode<synchronous>, transform_indices = @transform_4, window_bounds = array<i64: 1, 128>}, {pipeline_mode = #tpu.pipeline_mode<synchronous>, transform_indices = @transform_5, window_bounds = array<i64: 128, 128>}, {pipeline_mode = #tpu.pipeline_mode<synchronous>, transform_indices = @transform_6, window_bounds = array<i64: 1, 128>}, {transform_indices = @transform_7, window_bounds = array<i64: 8, 128>}]} {
    %c0 = arith.constant 0 : index
    %c0_0 = arith.constant 0 : index
    %0 = vector.load %arg1[%c0, %c0_0] : memref<8x8xf32, #tpu.memory_space<vmem>>, vector<8x8xf32>
    %c0_1 = arith.constant 0 : index
    %c0_2 = arith.constant 0 : index
    %1 = vector.load %arg3[%c0_1, %c0_2] : memref<1x128xf32, #tpu.memory_space<vmem>>, vector<1x128xf32>
    %2 = vector.extract_strided_slice %0 {offsets = [0, 0], sizes = [8, 1], strides = [1, 1]} : vector<8x8xf32> to vector<8x1xf32>
    %c0_3 = arith.constant 0 : index
    %c0_4 = arith.constant 0 : index
    %3 = vector.load %arg2[%c0_3, %c0_4] : memref<8x128xf32, #tpu.memory_space<vmem>>, vector<1x128xf32>
    %4 = vector.broadcast %2 : vector<8x1xf32> to vector<8x128xf32>
    %5 = vector.broadcast %3 : vector<1x128xf32> to vector<8x128xf32>
    %6 = arith.mulf %4, %5 : vector<8x128xf32>
    %7 = vector.broadcast %1 : vector<1x128xf32> to vector<8x128xf32>
    %8 = arith.addf %7, %6 : vector<8x128xf32>
    %9 = vector.extract_strided_slice %0 {offsets = [0, 1], sizes = [8, 1], strides = [1, 1]} : vector<8x8xf32> to vector<8x1xf32>
    %c1 = arith.constant 1 : index
    %c0_5 = arith.constant 0 : index
    %10 = vector.load %arg2[%c1, %c0_5] : memref<8x128xf32, #tpu.memory_space<vmem>>, vector<1x128xf32>
    %11 = vector.broadcast %9 : vector<8x1xf32> to vector<8x128xf32>
    %12 = vector.broadcast %10 : vector<1x128xf32> to vector<8x128xf32>
    %13 = arith.mulf %11, %12 : vector<8x128xf32>
    %14 = arith.addf %8, %13 : vector<8x128xf32>
    %15 = vector.extract_strided_slice %0 {offsets = [0, 2], sizes = [8, 1], strides = [1, 1]} : vector<8x8xf32> to vector<8x1xf32>
    %c2 = arith.constant 2 : index
    %c0_6 = arith.constant 0 : index
    %16 = vector.load %arg2[%c2, %c0_6] : memref<8x128xf32, #tpu.memory_space<vmem>>, vector<1x128xf32>
    %17 = vector.broadcast %15 : vector<8x1xf32> to vector<8x128xf32>
    %18 = vector.broadcast %16 : vector<1x128xf32> to vector<8x128xf32>
    %19 = arith.mulf %17, %18 : vector<8x128xf32>
    %20 = arith.addf %14, %19 : vector<8x128xf32>
    %cst = arith.constant 0.000000e+00 : f32
    %21 = vector.broadcast %cst : f32 to vector<8x128xf32>
    %22 = arith.maximumf %20, %21 : vector<8x128xf32>
    %c0_7 = arith.constant 0 : index
    %c0_8 = arith.constant 0 : index
    %23 = vector.load %arg4[%c0_7, %c0_8] : memref<128x128xf32, #tpu.memory_space<vmem>>, vector<128x128xf32>
    %cst_9 = arith.constant dense<0.000000e+00> : vector<8x128xf32>
    %24 = tpu.matmul %22, %23, %cst_9 {dimension_numbers = #tpu.dot_dimension_numbers<[1], [0], [0], [1], [0, 0, 1, 1], [], []>} : vector<8x128xf32>, vector<128x128xf32>, vector<8x128xf32> -> vector<8x128xf32>
    %c0_10 = arith.constant 0 : index
    %c0_11 = arith.constant 0 : index
    %25 = vector.load %arg5[%c0_10, %c0_11] : memref<1x128xf32, #tpu.memory_space<vmem>>, vector<1x128xf32>
    %26 = vector.broadcast %25 : vector<1x128xf32> to vector<8x128xf32>
    %27 = arith.addf %24, %26 : vector<8x128xf32>
    %cst_12 = arith.constant 0.000000e+00 : f32
    %28 = vector.broadcast %cst_12 : f32 to vector<8x128xf32>
    %29 = arith.maximumf %27, %28 : vector<8x128xf32>
    %c0_13 = arith.constant 0 : index
    %c0_14 = arith.constant 0 : index
    %30 = vector.load %arg6[%c0_13, %c0_14] : memref<128x128xf32, #tpu.memory_space<vmem>>, vector<128x128xf32>
    %cst_15 = arith.constant dense<0.000000e+00> : vector<8x128xf32>
    %31 = tpu.matmul %29, %30, %cst_15 {dimension_numbers = #tpu.dot_dimension_numbers<[1], [0], [0], [1], [0, 0, 1, 1], [], []>} : vector<8x128xf32>, vector<128x128xf32>, vector<8x128xf32> -> vector<8x128xf32>
    %c0_16 = arith.constant 0 : index
    %c0_17 = arith.constant 0 : index
    %32 = vector.load %arg7[%c0_16, %c0_17] : memref<1x128xf32, #tpu.memory_space<vmem>>, vector<1x128xf32>
    %33 = vector.broadcast %32 : vector<1x128xf32> to vector<8x128xf32>
    %34 = arith.addf %31, %33 : vector<8x128xf32>
    %c0_18 = arith.constant 0 : index
    %c0_19 = arith.constant 0 : index
    %35 = vector.load %arg8[%c0_18, %c0_19] : memref<8x128xf32, #tpu.memory_space<vmem>>, vector<8x128xf32>
    tpu.vector_store %arg8[%c0_18, %c0_19], %34 {strides = array<i32>} : memref<8x128xf32, #tpu.memory_space<vmem>>, vector<8x128xf32>,
    return
  }
  func.func @transform_0(%arg0: i32) -> (i32, i32) {
    %c0_i32 = arith.constant 0 : i32
    %c0_i32_0 = arith.constant 0 : i32
    return %arg0, %c0_i32 : i32, i32
  }
  func.func @transform_1(%arg0: i32) -> (i32, i32) {
    %c0_i32 = arith.constant 0 : i32
    %c0_i32_0 = arith.constant 0 : i32
    %c0_i32_1 = arith.constant 0 : i32
    return %c0_i32, %c0_i32_0 : i32, i32
  }
  func.func @transform_2(%arg0: i32) -> (i32, i32) {
    %c0_i32 = arith.constant 0 : i32
    %c0_i32_0 = arith.constant 0 : i32
    %c0_i32_1 = arith.constant 0 : i32
    return %c0_i32, %c0_i32_0 : i32, i32
  }
  func.func @transform_3(%arg0: i32) -> (i32, i32) {
    %c0_i32 = arith.constant 0 : i32
    %c0_i32_0 = arith.constant 0 : i32
    %c0_i32_1 = arith.constant 0 : i32
    return %c0_i32, %c0_i32_0 : i32, i32
  }
  func.func @transform_4(%arg0: i32) -> (i32, i32) {
    %c0_i32 = arith.constant 0 : i32
    %c0_i32_0 = arith.constant 0 : i32
    %c0_i32_1 = arith.constant 0 : i32
    return %c0_i32, %c0_i32_0 : i32, i32
  }
  func.func @transform_5(%arg0: i32) -> (i32, i32) {
    %c0_i32 = arith.constant 0 : i32
    %c0_i32_0 = arith.constant 0 : i32
    %c0_i32_1 = arith.constant 0 : i32
    return %c0_i32, %c0_i32_0 : i32, i32
  }
  func.func @transform_6(%arg0: i32) -> (i32, i32) {
    %c0_i32 = arith.constant 0 : i32
    %c0_i32_0 = arith.constant 0 : i32
    %c0_i32_1 = arith.constant 0 : i32
    return %c0_i32, %c0_i32_0 : i32, i32
  }
  func.func @transform_7(%arg0: i32) -> (i32, i32) {
    %c0_i32 = arith.constant 0 : i32
    %c0_i32_0 = arith.constant 0 : i32
    return %arg0, %c0_i32 : i32, i32
  }
}

</mosaic_0001>

<bundles_post_ra>
// kernel: qnetwork_forward.1
= control target key start
LH: loop header
LB: loop body
LE: loop exit
PB: predicated region body
PF: predicated region fallthrough
CT: control target
= control target key end

     0   :  { %12 = vsyncpa [#allocation3], 0  ;;  %s573_s0 = inlined_call_operand.vmem [shape: f32[8,8], index: 0, kind: input, shape index: {}]   ;;  %s574_s1 = inlined_call_operand.vmem [shape: f32[8,128], index: 1, kind: input, shape index: {}]   ;;  %s575_s2 = inlined_call_operand.vmem [shape: f32[1,128], index: 2, kind: input, shape index: {}]   ;;  %s576_s3 = inlined_call_operand.hbm [shape: f32[128,128], index: 3, kind: input, shape index: {}]   ;;  %s577_s4 = inlined_call_operand.vmem [shape: f32[1,128], index: 4, kind: input, shape index: {}]   ;;  %s578_s5 = inlined_call_operand.hbm [shape: f32[128,128], index: 5, kind: input, shape index: {}]   ;;  %s579_s6 = inlined_call_operand.vmem [shape: f32[1,128], index: 6, kind: input, shape index: {}]   ;;  %s580_s7 = inlined_call_operand.vmem [shape: f32[8,128], index: 7, kind: output, shape index: {}]  }
   0x1   :  { %13 = vsyncpa [#allocation5], 0  ;;  %s458_s24 = smov [#allocation2]  }
   0x2   :  { %s25_s25 = sshll.u32 %s458_s24, 4  ;;  %s26_s25 = int_to_ptr.vmem [resolvable:$true] %s25_s25 }
   0x3   :  { %s422_s26 = scalar_lea.vmem %s26_s25, 2048  ;;  %p427_p1 = scmp.lt.s32.totalorder %s26_s25, %s26_s25 }
   0x4   :  { %p423_p0 = scmp.ne.s32.totalorder %s26_s25, %s422_s26  ;;  %p428_p2 = scmp.lt.s32.totalorder %s422_s26, %s422_s26 }
   0x6   :  { %p429_p3 = por %p428_p2, %p427_p1 }
   0x8   :  { %p430_p4 = pnand %p429_p3, %p423_p0 }
   0xa   :  { %433 = shalt.err (!%p430_p4)
}
   0xb   :  { %s459_s27 = smov 128   ;;  %s460_s28 = smov 8  }
   0xc   :  { %31 = dma.hbm_to_vmem [thread:$0]  %s576_s3, 2048, %s26_s25, [#allocation3], %s459_s27, %s459_s27, %s460_s28  }
   0xd   :  { %s461_s8 = smov [#allocation4]  }
   0xe   :  { %s39_s9 = sshll.u32 %s461_s8, 4  ;;  %s40_s9 = int_to_ptr.vmem [resolvable:$true] %s39_s9 }
   0xf   :  { %s442_s10 = scalar_lea.vmem %s40_s9, 2048  ;;  %p447_p6 = scmp.lt.s32.totalorder %s40_s9, %s40_s9 }
  0x10   :  { %p443_p5 = scmp.ne.s32.totalorder %s40_s9, %s442_s10  ;;  %p448_p7 = scmp.lt.s32.totalorder %s442_s10, %s442_s10 }
  0x12   :  { %p449_p8 = por %p448_p7, %p447_p6 }
  0x14   :  { %p450_p9 = pnand %p449_p8, %p443_p5 }
  0x16   :  { %453 = shalt.err (!%p450_p9)
}
  0x17   :  { %45 = dma.hbm_to_vmem [thread:$0]  %s578_s5, 2048, %s40_s9, [#allocation5], %s459_s27, %s459_s27, %s460_s28  }
  0x18   :  { %454 = dma.done.wait [#allocation3], 2048  }
  0x19   :  { %455 = vsyncadd [#allocation3], 4294965248 }
  0x1a   :  { %456 = dma.done.wait [#allocation5], 2048  }
  0x1b   :  { %457 = vsyncadd [#allocation5], 4294965248  ;;  %v462_v0 = vmov 0   ;;  %v463_v1 = vmov 2   ;;  %v464_v2 = vmov 0.0   ;;  %v54_v3 = vld [vmem:[%s573_s0] sm:$0xff] }
  0x1c   :  { %410 = vset.pattern.permute.xlu0 %v462_v0  ;;  %412 = vset.pattern.permute.xlu1 %v463_v1  ;;  %v112_v4 = vld [vmem:[#allocation2 + $0x78] sm:$0xff]  ;;  %v111_v5 = vld [vmem:[#allocation2 + $0x70] sm:$0xff]  ;;  %v110_v6 = vld [vmem:[#allocation2 + $0x68] sm:$0xff]  ;;  %v465_v7 = vmov 1   ;;  %vm466_vm0 = vmmov 0  }
  0x1d   :  { %331 = vmatprep.subr.mxu0 %v464_v2  ;;  %366 = vmatprep.subr.mxu1 %v464_v2  ;;  %v109_v8 = vld [vmem:[#allocation2 + $0x60] sm:$0xff]  ;;  %v108_v9 = vld [vmem:[#allocation2 + $0x58] sm:$0xff]  ;;  %v107_v10 = vld [vmem:[#allocation2 + $0x50] sm:$0xff] }
  0x1e   :  { %59 = vperm.xlu0 %410, %v54_v3   ;;  %87 = vperm.xlu1 %412, %v54_v3   ;;  %v206_v11 = vld [vmem:[#allocation4 + $0x78] sm:$0xff]  ;;  %v205_v12 = vld [vmem:[#allocation4 + $0x70] sm:$0xff]  ;;  %v106_v13 = vld [vmem:[#allocation2 + $0x48] sm:$0xff] }
  0x1f   :  { %332 = vmatpush3.msra.mxu0 %v112_v4  ;;  %363 = vmatprep.mubr.msk.f32.mxu0 %vm466_vm0, %v464_v2  ;;  %v204_v14 = vld [vmem:[#allocation4 + $0x68] sm:$0xff]  ;;  %v105_v15 = vld [vmem:[#allocation2 + $0x40] sm:$0xff]  ;;  %v104_v17 = vld [vmem:[#allocation2 + $0x38] sm:$0xff] }
  0x20   :  { %333 = vmatprep.subr.mxu0 %v464_v2  ;;  %398 = vmatprep.mubr.msk.f32.mxu1 %vm466_vm0, %v464_v2  ;;  %v203_v16 = vld [vmem:[#allocation4 + $0x60] sm:$0xff]  ;;  %v202_v18 = vld [vmem:[#allocation4 + $0x58] sm:$0xff]  ;;  %v103_v19 = vld [vmem:[#allocation2 + $0x30] sm:$0xff] }
  0x21   :  { %334 = vmatpush3.msra.mxu0 %v111_v5  ;;  %367 = vmatpush3.msra.mxu1 %v206_v11  ;;  %v201_v20 = vld [vmem:[#allocation4 + $0x50] sm:$0xff]  ;;  %v102_v21 = vld [vmem:[#allocation2 + $0x28] sm:$0xff]  ;;  %v101_v23 = vld [vmem:[#allocation2 + $0x20] sm:$0xff] }
  0x22   :  { %411 = vset.pattern.permute.xlu0 %v465_v7  ;;  %335 = vmatprep.subr.mxu0 %v464_v2  ;;  %v200_v22 = vld [vmem:[#allocation4 + $0x48] sm:$0xff]  ;;  %v199_v24 = vld [vmem:[#allocation4 + $0x40] sm:$0xff]  ;;  %v100_v25 = vld [vmem:[#allocation2 + $0x18] sm:$0xff] }
  0x23   :  { %76 = vperm.xlu0 %411, %v54_v3   ;;  %336 = vmatpush3.msra.mxu0 %v110_v6  ;;  %v198_v26 = vld [vmem:[#allocation4 + $0x38] sm:$0xff]  ;;  %v99_v27 = vld [vmem:[#allocation2 + $0x10] sm:$0xff]  ;;  %v98_v29 = vld [vmem:[#allocation2 + $0x8] sm:$0xff] }
  0x24   :  { %337 = vmatprep.subr.mxu0 %v464_v2  ;;  %368 = vmatprep.subr.mxu1 %v464_v2  ;;  %v197_v28 = vld [vmem:[#allocation4 + $0x30] sm:$0xff]  ;;  %v196_v30 = vld [vmem:[#allocation4 + $0x28] sm:$0xff]  ;;  %v97_v31 = vld [vmem:[#allocation2] sm:$0xff] }
  0x25   :  { %338 = vmatpush3.msra.mxu0 %v109_v8  ;;  %369 = vmatpush3.msra.mxu1 %v205_v12  ;;  %v195_v32 = vld [vmem:[#allocation4 + $0x20] sm:$0xff]  ;;  %v194_v33 = vld [vmem:[#allocation4 + $0x18] sm:$0xff]  ;;  %v193_v48 = vld [vmem:[#allocation4 + $0x10] sm:$0xff] }
  0x26   :  { %339 = vmatprep.subr.mxu0 %v464_v2  ;;  %370 = vmatprep.subr.mxu1 %v464_v2  ;;  %v291_v34 = vld [vmem:[%s574_s1] ss:$0 sm:$0xff]  ;;  %v293_v38 = vld [vmem:[%s574_s1 + $0x1] ss:$0 sm:$0xff]  ;;  %v294_v39 = vld [vmem:[%s574_s1 + $0x2] ss:$0 sm:$0xff] }
  0x27   :  { %340 = vmatpush3.msra.mxu0 %v108_v9  ;;  %371 = vmatpush3.msra.mxu1 %v204_v14  ;;  %v292_v37 = vld [vmem:[%s575_s2] ss:$0 sm:$0xff]  ;;  %v192_v49 = vld [vmem:[#allocation4 + $0x8] sm:$0xff] }
  0x28   :  { %341 = vmatprep.subr.mxu0 %v464_v2  ;;  %372 = vmatprep.subr.mxu1 %v464_v2  ;;  %v191_v50 = vld [vmem:[#allocation4] sm:$0xff] }
  0x29   :  { %342 = vmatpush3.msra.mxu0 %v107_v10  ;;  %373 = vmatpush3.msra.mxu1 %v203_v16  ;;  %v295_v51 = vld [vmem:[%s577_s4] ss:$0 sm:$0xff] }
  0x2a   :  { %343 = vmatprep.subr.mxu0 %v464_v2  ;;  %374 = vmatprep.subr.mxu1 %v464_v2  ;;  %v296_v56 = vld [vmem:[%s579_s6] ss:$0 sm:$0xff] }
  0x2b   :  { %344 = vmatpush3.msra.mxu0 %v106_v13  ;;  %375 = vmatpush3.msra.mxu1 %v202_v18 }
  0x2c   :  { %345 = vmatprep.subr.mxu0 %v464_v2  ;;  %376 = vmatprep.subr.mxu1 %v464_v2 }
  0x2d   :  { %346 = vmatpush3.msra.mxu0 %v105_v15  ;;  %377 = vmatpush3.msra.mxu1 %v201_v20 }
  0x2e   :  { %347 = vmatprep.subr.mxu0 %v464_v2  ;;  %378 = vmatprep.subr.mxu1 %v464_v2 }
  0x2f   :  { %348 = vmatpush3.msra.mxu0 %v104_v17  ;;  %379 = vmatpush3.msra.mxu1 %v200_v22 }
  0x30   :  { %349 = vmatprep.subr.mxu0 %v464_v2  ;;  %380 = vmatprep.subr.mxu1 %v464_v2 }
  0x31   :  { %350 = vmatpush3.msra.mxu0 %v103_v19  ;;  %381 = vmatpush3.msra.mxu1 %v199_v24 }
  0x32   :  { %351 = vmatprep.subr.mxu0 %v464_v2  ;;  %382 = vmatprep.subr.mxu1 %v464_v2 }
  0x33   :  { %352 = vmatpush3.msra.mxu0 %v102_v21  ;;  %383 = vmatpush3.msra.mxu1 %v198_v26 }
  0x34   :  { %353 = vmatprep.subr.mxu0 %v464_v2  ;;  %384 = vmatprep.subr.mxu1 %v464_v2 }
  0x35   :  { %354 = vmatpush3.msra.mxu0 %v101_v23  ;;  %385 = vmatpush3.msra.mxu1 %v197_v28 }
  0x36   :  { %355 = vmatprep.subr.mxu0 %v464_v2  ;;  %386 = vmatprep.subr.mxu1 %v464_v2 }
  0x37   :  { %356 = vmatpush3.msra.mxu0 %v100_v25  ;;  %387 = vmatpush3.msra.mxu1 %v196_v30 }
  0x38   :  { %357 = vmatprep.subr.mxu0 %v464_v2  ;;  %388 = vmatprep.subr.mxu1 %v464_v2 }
  0x39   :  { %358 = vmatpush3.msra.mxu0 %v99_v27  ;;  %389 = vmatpush3.msra.mxu1 %v195_v32 }
  0x3a   :  { %359 = vmatprep.subr.mxu0 %v464_v2  ;;  %413 = vset.pattern.permute.xlu0 %v463_v1 }
  0x3b   :  { %360 = vmatpush3.msra.mxu0 %v98_v29  ;;  %390 = vmatprep.subr.mxu1 %v464_v2 }
  0x3c   :  { %361 = vmatprep.subr.mxu0 %v464_v2  ;;  %391 = vmatpush3.msra.mxu1 %v194_v33 }
  0x3d   :  { %362 = vmatpush3.msra.mxu0 %v97_v31  ;;  %392 = vmatprep.subr.mxu1 %v464_v2 }
  0x3e   :  { %393 = vmatpush3.msra.mxu1 %v193_v48 }
  0x3f   :  { %394 = vmatprep.subr.mxu1 %v464_v2 }
  0x40   :  { %395 = vmatpush3.msra.mxu1 %v192_v49 }
  0x41   :  { %396 = vmatprep.subr.mxu1 %v464_v2 }
  0x42   :  { %397 = vmatpush3.msra.mxu1 %v191_v50 }
  0x99   :  { %v60_v35 = vpop.permute.xlu0 %59  ;;  %v88_v40 = vpop.permute.xlu1 %87 }
  0x9a   :  { %v66_v36 = vmul.f32 %v291_v34, %v60_v35  ;;  %v94_v44 = vmul.f32 %v294_v39, %v88_v40 }
  0x9c   :  { %v73_v42 = vadd.f32 %v292_v37, %v66_v36 }
  0x9e   :  { %v77_v41 = vpop.permute.xlu0 %76 }
  0x9f   :  { %v83_v43 = vmul.f32 %v293_v38, %v77_v41 }
  0xa1   :  { %v84_v45 = vadd.f32 %v83_v43, %v73_v42 }
  0xa3   :  { %v95_v46 = vadd.f32 %v94_v44, %v84_v45 }
  0xa5   :  { %v96_v47 = vmax.f32 %v95_v46, 0.0 }
  0xa7   :  { %364 = vmatmul.mubr.f32.vlgmr.msra.gmra.mxu0 %v96_v47 }
 0x167   :  { %v186_v52 = vpop.f32.mrf.mxu0 }
 0x168   :  { %v187_v53 = vadd.f32 %v295_v51, %v186_v52 }
 0x169   :  { %v365_v54 = vpop.f32.mrf.mxu0 }
 0x16a   :  { %v190_v55 = vmax.f32 %v187_v53, 0.0 }
 0x16c   :  { %399 = vmatmul.mubr.f32.vlgmr.msra.gmra.mxu1 %v190_v55 }
 0x22c   :  { %v280_v57 = vpop.f32.mrf.mxu1 }
 0x22d   :  { %v281_v58 = vadd.f32 %v296_v56, %v280_v57 }
 0x22e   :  { %v400_v59 = vpop.f32.mrf.mxu1 }
 0x22f   :  { %284 = vst [vmem:[%s580_s7] sm:$0xff] %v281_v58 }
 0x230   :  { %289 = vsyncpa [#allocation3], 1 }
 0x231   :  { %290 = vsyncpa [#allocation5], 1 }

</bundles_post_ra>
